<compile_context>
chip_gen: v7x
topology: tpu7x:2x2x1
jax: 0.10.0
libtpu: 0.0.40
codegen_flags: <defaults>
</compile_context>

<pallas_src>
import jax
import jax.numpy as jnp
from jax.experimental import pallas as pl
from jax.experimental.pallas import tpu as pltpu


def _cdiv(a, b):
    return -(-a // b)


def _round_up(a, b):
    return _cdiv(a, b) * b


def _conv_mlp_kernel(xc_ref, xl_ref, xr_ref, w_ref, b_ref, o_ref):
    # xc_ref : (1, TL, C_in)   current length tile (used directly, never copied)
    # xl_ref : (1, H, C_in)    H rows ending just before the tile (row H-1 = x[l0-1])
    # xr_ref : (1, H, C_in)    H rows starting just after the tile (row 0 = x[l0+TL])
    # w_ref  : (3, C_in, TN)   w_ref[k] = W_k^T (tap k of the Conv1d kernel)
    # b_ref  : (1, TN)         bias (f32)
    # o_ref  : (1, TL, TN)     output tile
    TL = o_ref.shape[1]
    H = xl_ref.shape[1]
    j = pl.program_id(2)
    last = pl.num_programs(2) - 1

    cur = xc_ref[0]                                    # (TL, C_in), no scratch copy

    # One halo row per side; Conv1d zero padding at the sequence boundaries is
    # realized by zeroing exactly that row (not whole halo blocks).
    left = xl_ref[0, pl.ds(H - 1, 1), :]               # (1, C_in) = x[l0-1]
    left = jnp.where(j == 0, jnp.zeros_like(left), left)
    right = xr_ref[0, pl.ds(0, 1), :]                  # (1, C_in) = x[l0+TL]
    right = jnp.where(j == last, jnp.zeros_like(right), right)

    # Shifted views via sublane roll (XLU) + single-row select; no im2col concat.
    row = jax.lax.broadcasted_iota(jnp.int32, cur.shape, 0)
    prev = jnp.where(row == 0, left, pltpu.roll(cur, shift=1, axis=0))
    nxt = jnp.where(row == TL - 1, right, pltpu.roll(cur, shift=TL - 1, axis=0))

    # Three accumulated MXU matmuls, f32 accumulation.
    acc = jnp.dot(prev, w_ref[0], preferred_element_type=jnp.float32)
    acc = acc + jnp.dot(cur, w_ref[1], preferred_element_type=jnp.float32)
    acc = acc + jnp.dot(nxt, w_ref[2], preferred_element_type=jnp.float32)
    o_ref[0] = (acc + b_ref[...]).astype(o_ref.dtype)


def conv_mlp(x, weight, bias, *, compute_dtype=None, target_tile_l=512,
             weight_block_budget=16 * 1024 * 1024):
    """x: (B, L, C_in); weight: (C_out, C_in, 3) [PyTorch Conv1d layout]; bias: (C_out,).
    Returns (B, L, C_out).  Dropout is identity (eval / p=0)."""
    B, L, C_in = x.shape
    C_out = weight.shape[0]
    out_dtype = x.dtype

    # Optional low-precision compute (bf16 on v6e/v7x); accumulation stays f32.
    if compute_dtype is not None:
        x = x.astype(compute_dtype)
        weight = weight.astype(compute_dtype)

    elt_in = jnp.dtype(x.dtype).itemsize
    elt_out = jnp.dtype(out_dtype).itemsize
    elt_w = jnp.dtype(weight.dtype).itemsize

    # Sublane packing: 8 rows per vreg tile for f32, 16 for bf16, 32 for int8/fp8.
    H = 8 * max(1, 4 // elt_in)

    # Weight layout: (C_out, C_in, 3) -> (3, C_in, C_out), w3[k] = W_k^T.
    w3 = jnp.transpose(weight, (2, 1, 0))

    # Lane-dense output only when the write amplification is small (<=25%);
    # tiny C_out keeps masked stores instead of padding the HBM writeback.
    C_out_pad = _round_up(C_out, 128)
    pad_n = C_out_pad - C_out
    C_out_p = C_out_pad if (pad_n > 0 and C_out >= 128 and 4 * pad_n <= C_out) else C_out
    if C_out_p != C_out:
        w3 = jnp.pad(w3, ((0, 0), (0, 0), (0, C_out_p - C_out)))
        bias = jnp.pad(bias, (0, C_out_p - C_out))
    b2 = bias.reshape(1, C_out_p).astype(jnp.float32)

    # Optional C_out tiling: bound the resident weight slab (matters on v7x 64 MiB).
    TN = C_out_p
    if C_out_p % 128 == 0 and 3 * C_in * C_out_p * elt_w > weight_block_budget:
        TN = 128
        for d in range(128, C_out_p + 1, 128):
            if C_out_p % d == 0 and 3 * C_in * d * elt_w <= weight_block_budget:
                TN = d
    nN = C_out_p // TN

    # L tiling: TL multiple of H, sized against the real VMEM residency.
    nL = max(1, _cdiv(L, target_tile_l))
    TL = _round_up(_cdiv(L, nL), H)

    def residency(tl):
        x_tiles = 2 * tl * C_in * elt_in + 2 * 2 * H * C_in * elt_in
        out_tiles = 2 * tl * TN * elt_out
        w_b = 2 * (3 * C_in * TN * elt_w + TN * 4)    # conservatively x2 buffers
        acc = tl * TN * 4                             # f32 accumulator intermediate
        return x_tiles + out_tiles + w_b + acc

    try:
        info = pltpu.get_tpu_info()
        vmem_cap = int(getattr(info, "vmem_capacity_bytes", 64 * 1024 * 1024))
    except Exception:
        vmem_cap = 64 * 1024 * 1024                   # v7x-safe fallback
    budget = int(0.75 * vmem_cap)
    while TL > H and residency(TL) > budget:
        TL = max(H, _round_up(TL // 2, H))
    nL = _cdiv(L, TL)
    L_p = nL * TL
    if L_p != L:
        # Remainder-only zero pad; these zero rows also realize the Conv1d zero
        # padding past the last real row.  The halo is never padded in HBM.
        x = jnp.pad(x, ((0, 0), (0, L_p - L), (0, 0)))

    res = residency(TL)
    vmem_limit = int(min(max(2 * res, 32 * 1024 * 1024), int(0.9 * vmem_cap)))
    vmem_limit = max(vmem_limit, 16 * 1024 * 1024)

    tl_blkH = TL // H
    nblkH = L_p // H

    in_specs = [
        # center tile (consumed in place)
        pl.BlockSpec((1, TL, C_in), lambda b, n, j: (b, j, 0)),
        # H-row halo block ending just before the tile (clamped at the first tile)
        pl.BlockSpec((1, H, C_in),
                     lambda b, n, j: (b, jnp.maximum(j * tl_blkH - 1, 0), 0)),
        # H-row halo block starting just after the tile (clamped at the last tile)
        pl.BlockSpec((1, H, C_in),
                     lambda b, n, j: (b, jnp.minimum((j + 1) * tl_blkH, nblkH - 1), 0)),
        # tap weights / bias (constant over b,j -> DMA'd only when n changes)
        pl.BlockSpec((3, C_in, TN), lambda b, n, j: (0, 0, n)),
        pl.BlockSpec((1, TN), lambda b, n, j: (0, n)),
    ]
    out_specs = pl.BlockSpec((1, TL, TN), lambda b, n, j: (b, j, n))

    cost = pl.CostEstimate(
        flops=2 * B * L_p * 3 * C_in * C_out_p,
        transcendentals=0,
        bytes_accessed=(B * L_p * C_in * elt_in * nN
                        + 3 * C_in * C_out_p * elt_w
                        + C_out_p * 4
                        + B * L_p * C_out_p * elt_out),
    )

    out = pl.pallas_call(
        _conv_mlp_kernel,
        out_shape=jax.ShapeDtypeStruct((B, L_p, C_out_p), out_dtype),
        grid_spec=pltpu.PrefetchScalarGridSpec(
            num_scalar_prefetch=0,
            grid=(B, nN, nL),
            in_specs=in_specs,
            out_specs=out_specs,
        ),
        compiler_params=pltpu.CompilerParams(
            dimension_semantics=("parallel", "parallel", "parallel"),
            vmem_limit_bytes=vmem_limit),
        cost_estimate=cost,
    )(x, x, x, w3, b2)

    if L_p != L or C_out_p != C_out:
        out = out[:, :L, :C_out]
    return out


def conv_mlp_ref(x, weight, bias):
    """Pure-JAX reference matching nn.Conv1d(in, out, 3, stride=1, padding=1)."""
    B, L, C_in = x.shape
    x_pad = jnp.pad(x, ((0, 0), (1, 1), (0, 0)))
    acc = 0.0
    for k in range(3):
        acc = acc + jnp.einsum("blc,co->blo", x_pad[:, k:k + L, :],
                               weight[:, :, k].T)
    return acc + bias[None, None, :]


if __name__ == "__main__":
    key = jax.random.PRNGKey(0)
    B, L, C_in, C_out = 2, 8, 4, 32

    kx, kw, kb = jax.random.split(key, 3)
    x = jax.random.normal(kx, (B, L, C_in), dtype=jnp.float32)

    # Deterministic parameter init (shapes from nn.Conv1d(in_dim, out_dim, 3)).
    fan_in = C_in * 3
    bound = 1.0 / (fan_in ** 0.5)
    weight = jax.random.uniform(kw, (C_out, C_in, 3), jnp.float32, -bound, bound)
    bias = jax.random.uniform(kb, (C_out,), jnp.float32, -bound, bound)
    # TODO(synk): Dropout(p=resid_pdrop) is identity in eval mode / p=0.0, so it is omitted.

    y = jax.block_until_ready(jax.jit(conv_mlp)(x, weight, bias))
    y_ref = conv_mlp_ref(x, weight, bias)
    assert y.shape == (B, L, C_out)
    assert jnp.allclose(y, y_ref, atol=1e-5, rtol=1e-5), float(jnp.max(jnp.abs(y - y_ref)))

    # Multi-tile L path (exercises the inter-tile halo + boundary zeroing).
    L2 = 24
    x2 = jax.random.normal(jax.random.PRNGKey(1), (B, L2, C_in), dtype=jnp.float32)
    f2 = jax.jit(lambda a, w, b: conv_mlp(a, w, b, target_tile_l=8))
    y2 = jax.block_until_ready(f2(x2, weight, bias))
    y2_ref = conv_mlp_ref(x2, weight, bias)
    assert y2.shape == (B, L2, C_out)
    assert jnp.allclose(y2, y2_ref, atol=1e-5, rtol=1e-5), float(jnp.max(jnp.abs(y2 - y2_ref)))

    print("KERNEL_OK")
</pallas_src>

<mosaic_0001>
module attributes {stable_mosaic.version = 11 : i64} {
  func.func @_conv_mlp_kernel(%arg0: i32, %arg1: i32, %arg2: i32, %arg3: memref<1x8x4xf32, #tpu.memory_space<vmem>>, %arg4: memref<1x8x4xf32, #tpu.memory_space<vmem>>, %arg5: memref<1x8x4xf32, #tpu.memory_space<vmem>>, %arg6: memref<3x4x32xf32, #tpu.memory_space<vmem>>, %arg7: memref<1x32xf32, #tpu.memory_space<vmem>>, %arg8: memref<1x8x32xf32, #tpu.memory_space<vmem>>) attributes {dimension_semantics = [#tpu.dimension_semantics<parallel>, #tpu.dimension_semantics<parallel>, #tpu.dimension_semantics<parallel>], iteration_bounds = array<i64: 2, 1, 1>, scalar_prefetch = 0 : i64, scratch_operands = 0 : i64, tpu.core_type = #tpu.core_type<tc>, window_params = [{transform_indices = @transform_0, window_bounds = array<i64: 1, 8, 4>}, {transform_indices = @transform_1, window_bounds = array<i64: 1, 8, 4>}, {transform_indices = @transform_2, window_bounds = array<i64: 1, 8, 4>}, {transform_indices = @transform_3, window_bounds = array<i64: 3, 4, 32>}, {transform_indices = @transform_4, window_bounds = array<i64: 1, 32>}, {transform_indices = @transform_5, window_bounds = array<i64: 1, 8, 32>}]} {
    %c0 = arith.constant 0 : index
    %c0_0 = arith.constant 0 : index
    %c0_1 = arith.constant 0 : index
    %0 = vector.load %arg3[%c0, %c0_0, %c0_1] : memref<1x8x4xf32, #tpu.memory_space<vmem>>, vector<1x8x4xf32>
    %1 = vector.shape_cast %0 : vector<1x8x4xf32> to vector<8x4xf32>
    %c0_2 = arith.constant 0 : index
    %c7 = arith.constant 7 : index
    %c0_3 = arith.constant 0 : index
    %2 = vector.load %arg4[%c0_2, %c7, %c0_3] : memref<1x8x4xf32, #tpu.memory_space<vmem>>, vector<1x1x4xf32>
    %3 = vector.shape_cast %2 : vector<1x1x4xf32> to vector<1x4xf32>
    %c0_i32 = arith.constant 0 : i32
    %4 = arith.cmpi eq, %arg2, %c0_i32 : i32
    %cst = arith.constant 0.000000e+00 : f32
    %5 = vector.broadcast %cst : f32 to vector<1x4xf32>
    %6 = arith.select %4, %5, %3 : vector<1x4xf32>
    %c0_4 = arith.constant 0 : index
    %c0_5 = arith.constant 0 : index
    %c0_6 = arith.constant 0 : index
    %7 = vector.load %arg5[%c0_4, %c0_5, %c0_6] : memref<1x8x4xf32, #tpu.memory_space<vmem>>, vector<1x1x4xf32>
    %8 = vector.shape_cast %7 : vector<1x1x4xf32> to vector<1x4xf32>
    %c0_i32_7 = arith.constant 0 : i32
    %9 = arith.cmpi eq, %arg2, %c0_i32_7 : i32
    %cst_8 = arith.constant 0.000000e+00 : f32
    %10 = vector.broadcast %cst_8 : f32 to vector<1x4xf32>
    %11 = arith.select %9, %10, %8 : vector<1x4xf32>
    %12 = tpu.iota {dimensions = array<i32: 0>} : vector<8x4xi32>
    %c0_i32_9 = arith.constant 0 : i32
    %13 = vector.broadcast %c0_i32_9 : i32 to vector<8x4xi32>
    %14 = arith.cmpi eq, %12, %13 : vector<8x4xi32>
    %c1_i32 = arith.constant 1 : i32
    %15 = tpu.dynamic_rotate %1 by %c1_i32 dim 0 : vector<8x4xf32>, i32 -> vector<8x4xf32>
    %16 = vector.shape_cast %6 : vector<1x4xf32> to vector<1x4xf32>
    %17 = vector.broadcast %16 : vector<1x4xf32> to vector<8x4xf32>
    %18 = arith.select %14, %17, %15 : vector<8x4xi1>, vector<8x4xf32>
    %c7_i32 = arith.constant 7 : i32
    %19 = vector.broadcast %c7_i32 : i32 to vector<8x4xi32>
    %20 = arith.cmpi eq, %12, %19 : vector<8x4xi32>
    %c7_i32_10 = arith.constant 7 : i32
    %21 = tpu.dynamic_rotate %1 by %c7_i32_10 dim 0 : vector<8x4xf32>, i32 -> vector<8x4xf32>
    %22 = vector.shape_cast %11 : vector<1x4xf32> to vector<1x4xf32>
    %23 = vector.broadcast %22 : vector<1x4xf32> to vector<8x4xf32>
    %24 = arith.select %20, %23, %21 : vector<8x4xi1>, vector<8x4xf32>
    %c0_11 = arith.constant 0 : index
    %c0_12 = arith.constant 0 : index
    %c0_13 = arith.constant 0 : index
    %25 = vector.load %arg6[%c0_11, %c0_12, %c0_13] : memref<3x4x32xf32, #tpu.memory_space<vmem>>, vector<1x4x32xf32>
    %26 = vector.shape_cast %25 : vector<1x4x32xf32> to vector<4x32xf32>
    %cst_14 = arith.constant dense<0.000000e+00> : vector<8x32xf32>
    %27 = tpu.matmul %18, %26, %cst_14 {dimension_numbers = #tpu.dot_dimension_numbers<[1], [0], [0], [1], [0, 0, 1, 1], [], []>} : vector<8x4xf32>, vector<4x32xf32>, vector<8x32xf32> -> vector<8x32xf32>
    %c1 = arith.constant 1 : index
    %c0_15 = arith.constant 0 : index
    %c0_16 = arith.constant 0 : index
    %28 = vector.load %arg6[%c1, %c0_15, %c0_16] : memref<3x4x32xf32, #tpu.memory_space<vmem>>, vector<1x4x32xf32>
    %29 = vector.shape_cast %28 : vector<1x4x32xf32> to vector<4x32xf32>
    %cst_17 = arith.constant dense<0.000000e+00> : vector<8x32xf32>
    %30 = tpu.matmul %1, %29, %cst_17 {dimension_numbers = #tpu.dot_dimension_numbers<[1], [0], [0], [1], [0, 0, 1, 1], [], []>} : vector<8x4xf32>, vector<4x32xf32>, vector<8x32xf32> -> vector<8x32xf32>
    %31 = arith.addf %27, %30 : vector<8x32xf32>
    %c2 = arith.constant 2 : index
    %c0_18 = arith.constant 0 : index
    %c0_19 = arith.constant 0 : index
    %32 = vector.load %arg6[%c2, %c0_18, %c0_19] : memref<3x4x32xf32, #tpu.memory_space<vmem>>, vector<1x4x32xf32>
    %33 = vector.shape_cast %32 : vector<1x4x32xf32> to vector<4x32xf32>
    %cst_20 = arith.constant dense<0.000000e+00> : vector<8x32xf32>
    %34 = tpu.matmul %24, %33, %cst_20 {dimension_numbers = #tpu.dot_dimension_numbers<[1], [0], [0], [1], [0, 0, 1, 1], [], []>} : vector<8x4xf32>, vector<4x32xf32>, vector<8x32xf32> -> vector<8x32xf32>
    %35 = arith.addf %31, %34 : vector<8x32xf32>
    %c0_21 = arith.constant 0 : index
    %c0_22 = arith.constant 0 : index
    %36 = vector.load %arg7[%c0_21, %c0_22] : memref<1x32xf32, #tpu.memory_space<vmem>>, vector<1x32xf32>
    %37 = vector.broadcast %36 : vector<1x32xf32> to vector<8x32xf32>
    %38 = arith.addf %35, %37 : vector<8x32xf32>
    %c0_23 = arith.constant 0 : index
    %c0_24 = arith.constant 0 : index
    %c0_25 = arith.constant 0 : index
    %39 = vector.load %arg8[%c0_23, %c0_24, %c0_25] : memref<1x8x32xf32, #tpu.memory_space<vmem>>, vector<1x8x32xf32>
    %40 = vector.shape_cast %39 : vector<1x8x32xf32> to vector<8x32xf32>
    %41 = vector.shape_cast %38 : vector<8x32xf32> to vector<1x8x32xf32>
    tpu.vector_store %arg8[%c0_23, %c0_24, %c0_25], %41 {strides = array<i32>} : memref<1x8x32xf32, #tpu.memory_space<vmem>>, vector<1x8x32xf32>,
    return
  }
  func.func @transform_0(%arg0: i32, %arg1: i32, %arg2: i32) -> (i32, i32, i32) {
    %c0_i32 = arith.constant 0 : i32
    %c0_i32_0 = arith.constant 0 : i32
    return %arg0, %arg2, %c0_i32 : i32, i32, i32
  }
  func.func @transform_1(%arg0: i32, %arg1: i32, %arg2: i32) -> (i32, i32, i32) {
    %c1_i32 = arith.constant 1 : i32
    %0 = arith.muli %arg2, %c1_i32 : i32
    %c1_i32_0 = arith.constant 1 : i32
    %1 = arith.subi %0, %c1_i32_0 : i32
    %c0_i32 = arith.constant 0 : i32
    %2 = arith.maxsi %1, %c0_i32 : i32
    %c0_i32_1 = arith.constant 0 : i32
    %c0_i32_2 = arith.constant 0 : i32
    return %arg0, %2, %c0_i32_1 : i32, i32, i32
  }
  func.func @transform_2(%arg0: i32, %arg1: i32, %arg2: i32) -> (i32, i32, i32) {
    %c1_i32 = arith.constant 1 : i32
    %0 = arith.addi %arg2, %c1_i32 : i32
    %c1_i32_0 = arith.constant 1 : i32
    %1 = arith.muli %0, %c1_i32_0 : i32
    %c0_i32 = arith.constant 0 : i32
    %2 = arith.minsi %1, %c0_i32 : i32
    %c0_i32_1 = arith.constant 0 : i32
    %c0_i32_2 = arith.constant 0 : i32
    return %arg0, %2, %c0_i32_1 : i32, i32, i32
  }
  func.func @transform_3(%arg0: i32, %arg1: i32, %arg2: i32) -> (i32, i32, i32) {
    %c0_i32 = arith.constant 0 : i32
    %c0_i32_0 = arith.constant 0 : i32
    %c0_i32_1 = arith.constant 0 : i32
    return %c0_i32, %c0_i32_0, %arg1 : i32, i32, i32
  }
  func.func @transform_4(%arg0: i32, %arg1: i32, %arg2: i32) -> (i32, i32) {
    %c0_i32 = arith.constant 0 : i32
    %c0_i32_0 = arith.constant 0 : i32
    return %c0_i32, %arg1 : i32, i32
  }
  func.func @transform_5(%arg0: i32, %arg1: i32, %arg2: i32) -> (i32, i32, i32) {
    %c0_i32 = arith.constant 0 : i32
    return %arg0, %arg2, %arg1 : i32, i32, i32
  }
}

</mosaic_0001>

<bundles_post_ra>
// kernel: conv_mlp.1
= control target key start
LH: loop header
LB: loop body
LE: loop exit
PB: predicated region body
PF: predicated region fallthrough
CT: control target
= control target key end

     0   :  { %10 = vsyncpa [#allocation3], 0  ;;  %s1150_s0 = inlined_call_operand.vmem [shape: f32[2,8,4], index: 0, kind: input, shape index: {}, may-alias: {0,1,2}]   ;;  %s1151_s1 = inlined_call_operand.vmem [shape: f32[2,8,4], index: 1, kind: input, shape index: {}, may-alias: {0,1,2}]   ;;  %s1152_s2 = inlined_call_operand.vmem [shape: f32[2,8,4], index: 2, kind: input, shape index: {}, may-alias: {0,1,2}]   ;;  %s1153_s3 = inlined_call_operand.vmem [shape: f32[3,4,32], index: 3, kind: input, shape index: {}]   ;;  %s1154_s4 = inlined_call_operand.vmem [shape: f32[1,32], index: 4, kind: input, shape index: {}]   ;;  %s1155_s5 = inlined_call_operand.hbm [shape: f32[2,8,32], index: 5, kind: output, shape index: {}]  }
   0x1   :  { %12 = vsyncpa [#allocation3 + $0x1], 0  ;;  %s1017_s18 = smov 0   ;;  %s1019_s19 = smov 0  }
   0x2   :  { %s1021_s20 = smov 0   ;;  %s1023_s1 = smov 0  }
   0x3   :  { %s1025_s2 = smov 0   ;;  %s1027_s21 = smov 0  }
   0x4 LB: > { %s802_s22 = sadd.s32 4294967295, %s982_s21   ;;  %s803_s23 = sadd.s32 4294967294, %s982_s21   ;;  %s982_s21 = sphi %s1027_s21, %s18_s21   ;;  %s978_s2 = sphi %s1025_s2, %s1162_s2   ;;  %s974_s1 = sphi %s1023_s1, %s1161_s1   ;;  %s970_s20 = sphi %s1021_s20, %s1160_s20   ;;  %s966_s19 = sphi %s1019_s19, %s1159_s19   ;;  %s962_s18 = sphi %s1017_s18, %s1158_s18  }
   0x5   : > { %s37_s24 = sadd.s32 1, %s978_s2  ;;  %s196_s25 = sadd.s32 1, %s970_s20 }
   0x6   : > { %p39_p0 = scmp.ge.s32.totalorder %s37_s24, 2  ;;  %p206_p1 = scmp.ne.s32.totalorder %s970_s20, %s966_s19 }
   0x7   : > { %p207_p2 = scmp.eq.s32.totalorder %s802_s22, 1  ;;  %p212_p3 = scmp.ne.s32.totalorder %s966_s19, %s962_s18 }
   0x8   : > { %s1164_s24 = smov (%p39_p0, %s37_s24), 0  ;;  %p213_p5 = scmp.eq.s32.totalorder %s803_s23, 1 }
   0x9   : > { %p1057_p4 = por %p207_p2, %p206_p1  ;;  %s189_s27 = ssub.s32 %s978_s2, %s1164_s24 }
   0xa   : > { %p808_p6 = scmp.ge.s32.totalorder %s982_s21, 1  ;;  %p194_p7 = scmp.eq.s32.totalorder %s189_s27, 0 }
   0xb   : > { %p1064_p8 = por %p213_p5, %p212_p3  ;;  %p286_p9 = scmp.lt.s32.totalorder %s982_s21, 3 }
   0xc   : > { %s1070_s29 = scalar_select %p194_p7, %s970_s20, %s196_s25  }
   0xd   : > { %p287_p10 = pnand %p808_p6, %p286_p9 }
   0xe   : > { %v813_v0 = vld [vmem:[%s1153_s3 + $0x4] sm:$0xf] (!%p287_p10)  ;;  %vm415_vm0 = vcmask (!%p287_p10), 1043456   ;;  %p343_p11 = scmp.lt.s32.totalorder (!%p287_p10), %s974_s1, 1  ;;  %v392_v1 = vlaneseq (!%p287_p10)  ;;  %v984_v2 = vmov (!%p287_p10), 0.0   ;;  %vm985_vm1 = vmmov (!%p287_p10), 0  }
   0xf   : > { %290 = sbr.rel (%p287_p10) target bundleno = 262 (0x106), region = 40  ;;  %832 = vmatprep.subr.mxu0 (!%p287_p10), %v984_v2  ;;  %834 = vmatprep.mubr.msk.f32.mxu0 (!%p287_p10), %vm985_vm1, %v984_v2  ;;  %v408_v3 = vld [vmem:[%s1153_s3] sm:$0xf] (!%p287_p10)  ;;  %vm411_vm2 = vcmask (!%p287_p10), 31744   ;;  %v818_v6 = vld [vmem:[%s1153_s3 + $0x8] sm:$0xf] (!%p287_p10) }
  0x10   : > { %833 = vmatpush3.msk.msra.mxu0 (!%p287_p10), %vm415_vm0, %v813_v0  ;;  %837 = vmatprep.subr.mxu1 (!%p287_p10), %v984_v2  ;;  %v393_v4 = vshrl.u32 (!%p287_p10), %v392_v1, 7  ;;  %s340_s16 = sand.u32 (!%p287_p10), 1, %s966_s19   ;;  %v821_v19 = vld [vmem:[%s1154_s4] ss:$0 sm:$0xff] (!%p287_p10)  ;;  %s823_s25 = sshll.u32 (!%p287_p10), %s974_s1, 7  ;;  %vm652_vm5 = vcmask (!%p287_p10), 261120  }
  0x11   : > { %842 = vmatprep.subr.mxu0 (!%p287_p10), %v984_v2  ;;  %838 = vmatpush3.msk.msra.mxu1 (!%p287_p10), %vm415_vm0, %v408_v3  ;;  %s809_s17 = sshll.u32 (!%p287_p10), %s340_s16, 3  ;;  %s1103_s8 = scalar_lea.hbm (!%p287_p10), %s1155_s5, %s823_s25 }
  0x12   : > { %839 = vmatprep.mubr.msk.f32.mxu1 (!%p287_p10), %vm985_vm1, %v984_v2  ;;  %v398_v5 = vsub.s32 (!%p287_p10), 0, %v393_v4  ;;  %vm394_vm3 = vcmp.eq.s32.totalorder (!%p287_p10), %v393_v4, 0  ;;  %vm401_vm4 = vcmp.eq.s32.totalorder (!%p287_p10), %v393_v4, 7  ;;  %s342_s27 = scalar_lea.vmem (!%p287_p10), [#allocation2], %s809_s17 }
  0x13   : > { %s670_s30 = sshll.u32 (!%p287_p10), %s342_s27, 4  ;;  %s1105_s30 = int_to_ptr.vmem [resolvable:$true] %s670_s30 }
  0x14   : > { %v399_v8 = vrot.slane (!%p287_p10), %v984_v2, %v398_v5 }
  0x16   : > { %s344_s9 = scalar_select %p343_p11, %s974_s1, 1 }
  0x17   : > { %s986_s1 = smov [#allocation2]  }
  0x18   : > { %s810_s10 = sshll.u32 %s344_s9, 3  ;;  %s655_s9 = scalar_lea.sflag [#allocation3], %s340_s16 }
  0x19   : > { %s349_s13 = scalar_lea.vmem %s1150_s0, %s810_s10  ;;  %s904_s10 = scalar_lea.vmem %s1105_s30, 128 }
  0x1a   : > { %v383_v7 = vld [vmem:[%s349_s13] sm:$0xff]  ;;  %p905_p12 = scmp.ne.s32.totalorder %s1105_s30, %s904_s10  ;;  %s908_s11 = sshll.u32 %s986_s1, 4  ;;  %s909_s11 = int_to_ptr.vmem [resolvable:$false] %s908_s11 }
  0x1b   : > { %v395_v9 = vrot.slane %v383_v7, 7  ;;  %v402_v10 = vrot.slane %v383_v7, 1  ;;  %835 = vmatmul.mubr.msk.f32.vlgmr.msra.gmra.mrb[0].mxu0 %vm411_vm2, %v383_v7  ;;  %s910_s12 = scalar_lea.vmem %s909_s11, 256  ;;  %p911_p1 = scmp.lt.s32.totalorder %s1105_s30, %s909_s11 }
  0x1c   : > { %843 = vmatpush3.msk.msra.mxu0 %vm415_vm0, %v818_v6  ;;  %844 = vmatprep.mubr.msk.f32.mxu0 %vm985_vm1, %v984_v2  ;;  %p906_p13 = pnand %p905_p12, %p1057_p4  ;;  %p912_p2 = scmp.lt.s32.totalorder %s910_s12, %s904_s10 }
  0x1d   : > { %v400_v11 = vsel %vm394_vm3, %v399_v8, %v395_v9  ;;  %v407_v12 = vsel %vm401_vm4, %v399_v8, %v402_v10 }
  0x1e   : > { %840 = vmatmul.mubr.msk.f32.vlgmr.msra.gmra.mrb[0].mxu1 %vm411_vm2, %v400_v11  ;;  %p907_p0 = pneg %p906_p13  ;;  %p913_p3 = por %p912_p2, %p911_p1 }
  0x1f   : > { %845 = vmatmul.mubr.msk.f32.vlgmr.msra.gmra.mrb[2].mxu0 %vm411_vm2, %v407_v12 }
  0x20   : > { %p914_p5 = pnand %p913_p3, %p907_p0 }
  0xee   : > { %v485_v13 = vpop.f32.mrb[0].mxu0 }
  0xef   : > { %v836_v14 = vpop.f32.mrb[1].mxu0 }
  0xf1   : > { %v561_v15 = vpop.f32.mrb[0].mxu1 }
  0xf2   : > { %v562_v16 = vadd.f32 %v561_v15, %v485_v13  ;;  %v841_v17 = vpop.f32.mrb[1].mxu1  ;;  %v639_v18 = vpop.f32.mrb[2].mxu0 }
  0xf3   : > { %v846_v20 = vpop.f32.mrb[3].mxu0 }
  0xf4   : > { %v643_v21 = vadd.f32 %v639_v18, %v562_v16 }
  0xf6   : > { %v651_v22 = vadd.f32 %v821_v19, %v643_v21 }
  0xf8   : > { %653 = vst.msk [vmem:[%s342_s27] sm:$0xff] %vm652_vm5, %v651_v22 }
  0xf9   : > { %917 = shalt.err (!%p914_p5)
}
  0xfa   : > { %s918_s13 = scalar_lea.hbm %s1103_s8, 128  ;;  %s922_s16 = scalar_lea.hbm %s1155_s5, 256 }
  0xfb   : > { %p919_p6 = scmp.ne.s32.totalorder %s1103_s8, %s918_s13  ;;  %p923_p10 = scmp.lt.u32.totalorder %s1103_s8, %s1155_s5 }
  0xfc   : > { %p924_p11 = scmp.lt.u32.totalorder %s922_s16, %s918_s13  ;;  %p926_p13 = scmp.lt.u32.totalorder %s918_s13, %s1103_s8 }
  0xfd   : > { %p920_p7 = pnand %p919_p6, %p1057_p4 }
  0xfe   : > { %p925_p12 = por %p924_p11, %p923_p10 }
  0xff   : > { %p921_p9 = pneg %p920_p7 }
 0x100   : > { %p927_p0 = por %p926_p13, %p925_p12 }
 0x102   : > { %p928_p1 = pnand %p927_p0, %p921_p9 }
 0x104   : > { %931 = shalt.err (!%p928_p1)
}
 0x105   : > { %847 = dma.vmem_to_hbm [thread:$0]  (%p1057_p4), %s1105_s30, 128, %s1103_s8, %s655_s9  }
 0x106 PF: > { %p853_p2 = scmp.ge.s32.totalorder %s982_s21, 2  ;;  %s682_s23 = sand.u32 1, %s962_s18  }
 0x107   : > { %s683_s25 = scalar_lea.sflag [#allocation3], %s682_s23 }
 0x108   : > { %p850_p3 = pnand %p853_p2, %p1064_p8 }
 0x10a   : > { %957 = dma.done.wait (!%p850_p3), %s683_s25, 128  }
 0x10b   : > { %959 = vsyncadd (!%p850_p3), %s683_s25, 4294967168  ;;  %s18_s21 = sadd.s32 1, %s982_s21   ;;  %s1158_s18 = smov %s966_s19 }
 0x10c   : > { %p15_p5 = scmp.ge.s32.totalorder %s18_s21, 4   ;;  %s1159_s19 = smov %s970_s20 }
 0x10d   : > { %s1160_s20 = smov %s1070_s29  ;;  %s1161_s1 = smov %s978_s2 }
 0x10e   : > { %s1162_s2 = smov %s1164_s24  ;;  %17 = sbr.rel (!%p15_p5) target bundleno = 4 (0x4), region = 89 }
 0x115   :  { %688 = vsyncpa [#allocation3], 1 }
 0x116   :  { %690 = vsyncpa [#allocation3 + $0x1], 1 }

</bundles_post_ra>
